<compile_context>
chip_gen: v6e
topology: v6e:2x2x1
jax: 0.10.0
libtpu: 0.0.40
codegen_flags: <defaults>
</compile_context>

<pallas_src>
import jax
import jax.numpy as jnp
from jax.experimental import pallas as pl
from jax.experimental.pallas import tpu as pltpu


def _cdiv(a, b):
    return (a + b - 1) // b


def _round_up(x, m):
    return _cdiv(x, m) * m


def _vmem_limit_bytes():
    """Scoped-VMEM budget: ~3/4 of physical, capped at 100 MiB."""
    try:
        cap = pltpu.get_tpu_info().vmem_capacity_bytes
    except Exception:
        cap = 64 * 1024 * 1024  # conservative (v7x-sized) fallback
    return min(int(cap * 3 // 4), 100 * 1024 * 1024)


def _supports_buffered():
    """Probe whether this jax build accepts pipeline_mode=pl.Buffered(1)."""
    try:
        pl.BlockSpec((8, 128), lambda i, j: (0, 0), pipeline_mode=pl.Buffered(1))
        return True
    except Exception:
        return False


def _choose_tiles(M, D, E, O, *, out_bytes, compute_bytes, budget,
                  max_tm=256, max_tn=2048):
    """Pick (tm, tn): tm multiple of 8, tn multiple of 128, working set <= budget.

    tn is chosen so that it splits O as evenly as possible (minimal padding);
    tm likewise for the (usually tiny) row count.
    """
    tm = _round_up(_cdiv(M, _cdiv(M, max_tm)), 8)
    tn = _round_up(_cdiv(O, _cdiv(O, max_tn)), 128)

    def working_set(tm_, tn_):
        return (2 * tm_ * D * compute_bytes        # x row tile (double-buffered)
                + 2 * D * E * compute_bytes        # W1 (worst case double-buffered)
                + 2 * E * 4                        # b1
                + 2 * E * tn_ * compute_bytes      # W2 column tile (double-buffered)
                + 2 * tn_ * 4                      # b2 column tile
                + 2 * tm_ * tn_ * out_bytes        # output tile (double-buffered)
                + tm_ * E * compute_bytes)         # hidden-activation scratch

    while tn > 128 and working_set(tm, tn) > budget:
        tn = max(128, ((tn // 2) // 128) * 128)
    while tm > 8 and working_set(tm, tn) > budget:
        tm = max(8, ((tm // 2) // 8) * 8)
    return tm, tn


def prefix_mlp_kernel(x_ref, w1_ref, b1_ref, w2_ref, b2_ref, o_ref, h_ref):
    """out[i, j] = tanh(x[i] @ W1 + b1) @ W2[:, j] + b2[j].

    The hidden activation is computed once per row tile (first column step)
    and cached in VMEM scratch, then reused for every W2 column tile.
    """
    @pl.when(pl.program_id(1) == 0)
    def _():
        h = jnp.dot(x_ref[...], w1_ref[...], preferred_element_type=jnp.float32)
        h_ref[...] = jnp.tanh(h + b1_ref[...]).astype(h_ref.dtype)

    y = jnp.dot(h_ref[...], w2_ref[...], preferred_element_type=jnp.float32)
    o_ref[...] = (y + b2_ref[...]).astype(o_ref.dtype)


def _mlp_pallas(x, w1, b1, w2, b2, *, tm, tn, out_dtype, vmem_limit,
                single_buffer):
    M_pad, D = x.shape
    E = w1.shape[1]
    O_pad = w2.shape[1]
    grid = (M_pad // tm, O_pad // tn)

    def invariant_spec(shape, index_map):
        # Grid-invariant operands don't need double buffering.
        if single_buffer:
            return pl.BlockSpec(shape, index_map, pipeline_mode=pl.Buffered(1))
        return pl.BlockSpec(shape, index_map)

    cbytes = x.dtype.itemsize
    cost = pl.CostEstimate(
        flops=2 * M_pad * D * E + 2 * M_pad * E * O_pad,
        transcendentals=M_pad * E,
        bytes_accessed=((M_pad * D + D * E + E * O_pad) * cbytes
                        + (E + O_pad) * 4
                        + M_pad * O_pad * jnp.dtype(out_dtype).itemsize),
    )

    return pl.pallas_call(
        prefix_mlp_kernel,
        out_shape=jax.ShapeDtypeStruct((M_pad, O_pad), out_dtype),
        grid_spec=pltpu.PrefetchScalarGridSpec(
            num_scalar_prefetch=0,
            grid=grid,
            in_specs=[
                pl.BlockSpec((tm, D), lambda i, j: (i, 0)),    # x row tile
                invariant_spec((D, E), lambda i, j: (0, 0)),   # W1 (grid-invariant)
                invariant_spec((1, E), lambda i, j: (0, 0)),   # b1 (grid-invariant)
                pl.BlockSpec((E, tn), lambda i, j: (0, j)),    # W2 column tile
                pl.BlockSpec((1, tn), lambda i, j: (0, j)),    # b2 column tile
            ],
            out_specs=pl.BlockSpec((tm, tn), lambda i, j: (i, j)),
            scratch_shapes=[pltpu.VMEM((tm, E), x.dtype)],     # cached hidden act
        ),
        compiler_params=pltpu.CompilerParams(
            # Row axis parallel (megacore on multi-TC chips); column axis must
            # stay "arbitrary" because the hidden-activation scratch is reused
            # across column steps.
            dimension_semantics=("parallel", "arbitrary"),
            vmem_limit_bytes=vmem_limit,
        ),
        cost_estimate=cost,
    )(x, w1, b1, w2, b2)


def prefix_encoder_forward(prefix, embedding, w1, b1, w2, b2, *,
                           compute_dtype=jnp.bfloat16):
    """
    prefix    : (B, V) int32 token indices into the prefix embedding table
    embedding : (V, D)
    w1, b1    : (D, E), (E,)
    w2, b2    : (E, O), (O,)   with O = num_layers * 2 * token_dim
    returns   : (B, V, O)
    """
    B, V = prefix.shape
    D = embedding.shape[1]
    E = w1.shape[1]
    O = w2.shape[1]
    out_dtype = embedding.dtype
    M = B * V

    # Glue: embedding lookup (tiny gather) + flatten rows.
    x = jnp.take(embedding, prefix.reshape(-1), axis=0)        # (M, D)

    vmem_limit = _vmem_limit_bytes()
    tm, tn = _choose_tiles(
        M, D, E, O,
        out_bytes=jnp.dtype(out_dtype).itemsize,
        compute_bytes=jnp.dtype(compute_dtype).itemsize,
        budget=int(vmem_limit * 0.6),
    )
    # TODO(synk): for very large token_dim*encoder_hidden_size (W1 itself not
    # fitting VMEM) an additional reduction grid axis over E/D would be needed.

    M_pad = _round_up(M, tm)
    O_pad = _round_up(O, tn)

    # Cast to the MXU compute dtype (f32 accumulation inside the kernel) and
    # pad rows / output columns up to the tile so the grid divides evenly.
    x_c = jnp.pad(x.astype(compute_dtype), ((0, M_pad - M), (0, 0)))
    w1_c = w1.astype(compute_dtype)
    w2_c = jnp.pad(w2.astype(compute_dtype), ((0, 0), (0, O_pad - O)))
    b1_2d = b1.astype(jnp.float32).reshape(1, E)
    b2_2d = jnp.pad(b2.astype(jnp.float32), (0, O_pad - O)).reshape(1, O_pad)

    out = _mlp_pallas(x_c, w1_c, b1_2d, w2_c, b2_2d, tm=tm, tn=tn,
                      out_dtype=out_dtype, vmem_limit=vmem_limit,
                      single_buffer=_supports_buffered())

    return out[:M, :O].reshape(B, V, O)


def reference_forward(prefix, embedding, w1, b1, w2, b2):
    prefix_tokens = jnp.take(embedding, prefix, axis=0)
    h = jnp.tanh(prefix_tokens @ w1 + b1)
    return h @ w2 + b2


if __name__ == "__main__":
    # Small config that still exercises row padding (M=14 -> 16) and output
    # column padding (O=192 -> 256).
    batch = 2
    num_virtual_tokens = 7
    token_dim = 32
    encoder_hidden_size = 64
    num_layers = 3
    out_dim = num_layers * 2 * token_dim   # 192

    key = jax.random.PRNGKey(0)
    k_emb, k_w1, k_b1, k_w2, k_b2, _ = jax.random.split(key, 6)

    embedding = jax.random.normal(
        k_emb, (num_virtual_tokens, token_dim), jnp.float32) * 0.02
    w1 = jax.random.normal(
        k_w1, (token_dim, encoder_hidden_size), jnp.float32) * 0.05
    b1 = jax.random.normal(k_b1, (encoder_hidden_size,), jnp.float32) * 0.01
    w2 = jax.random.normal(
        k_w2, (encoder_hidden_size, out_dim), jnp.float32) * 0.05
    b2 = jax.random.normal(k_b2, (out_dim,), jnp.float32) * 0.01

    # Input: (batch, num_virtual_tokens) indices (arange broadcast over batch).
    prefix = jnp.broadcast_to(
        jnp.arange(num_virtual_tokens, dtype=jnp.int32)[None, :],
        (batch, num_virtual_tokens),
    )

    out = prefix_encoder_forward(prefix, embedding, w1, b1, w2, b2)
    out = jax.block_until_ready(out)

    ref = reference_forward(prefix, embedding, w1, b1, w2, b2)
    assert out.shape == (batch, num_virtual_tokens, out_dim)
    max_err = jnp.max(jnp.abs(out - ref))
    assert jnp.allclose(out, ref, atol=5e-3, rtol=5e-2), (
        f"mismatch vs reference: max abs err {max_err:.3e}")

    print("KERNEL_OK")
</pallas_src>

<mosaic_0001>
module attributes {stable_mosaic.version = 11 : i64} {
  func.func @prefix_mlp_kernel(%arg0: i32, %arg1: i32, %arg2: memref<16x32xbf16, #tpu.memory_space<vmem>>, %arg3: memref<32x64xbf16, #tpu.memory_space<vmem>>, %arg4: memref<1x64xf32, #tpu.memory_space<vmem>>, %arg5: memref<64x256xbf16, #tpu.memory_space<vmem>>, %arg6: memref<1x256xf32, #tpu.memory_space<vmem>>, %arg7: memref<16x256xf32, #tpu.memory_space<vmem>>, %arg8: memref<16x64xbf16, #tpu.memory_space<vmem>>) attributes {dimension_semantics = [#tpu.dimension_semantics<parallel>, #tpu.dimension_semantics<arbitrary>], iteration_bounds = array<i64: 1, 1>, scalar_prefetch = 0 : i64, scratch_operands = 1 : i64, tpu.core_type = #tpu.core_type<tc>, window_params = [{transform_indices = @transform_0, window_bounds = array<i64: 16, 32>}, {pipeline_mode = #tpu.pipeline_mode<synchronous>, transform_indices = @transform_1, window_bounds = array<i64: 32, 64>}, {pipeline_mode = #tpu.pipeline_mode<synchronous>, transform_indices = @transform_2, window_bounds = array<i64: 1, 64>}, {transform_indices = @transform_3, window_bounds = array<i64: 64, 256>}, {transform_indices = @transform_4, window_bounds = array<i64: 1, 256>}, {transform_indices = @transform_5, window_bounds = array<i64: 16, 256>}]} {
    %c0_i32 = arith.constant 0 : i32
    %0 = arith.cmpi eq, %arg1, %c0_i32 : i32
    %1 = arith.extui %0 : i1 to i32
    %c0_i32_0 = arith.constant 0 : i32
    %2 = arith.cmpi ne, %1, %c0_i32_0 : i32
    scf.if %2 {
      %c0_8 = arith.constant 0 : index
      %c0_9 = arith.constant 0 : index
      %10 = vector.load %arg2[%c0_8, %c0_9] : memref<16x32xbf16, #tpu.memory_space<vmem>>, vector<16x32xbf16>
      %c0_10 = arith.constant 0 : index
      %c0_11 = arith.constant 0 : index
      %11 = vector.load %arg3[%c0_10, %c0_11] : memref<32x64xbf16, #tpu.memory_space<vmem>>, vector<32x64xbf16>
      %cst_12 = arith.constant dense<0.000000e+00> : vector<16x64xf32>
      %12 = tpu.matmul %10, %11, %cst_12 {dimension_numbers = #tpu.dot_dimension_numbers<[1], [0], [0], [1], [0, 0, 1, 1], [], []>} : vector<16x32xbf16>, vector<32x64xbf16>, vector<16x64xf32> -> vector<16x64xf32>
      %c0_13 = arith.constant 0 : index
      %c0_14 = arith.constant 0 : index
      %13 = vector.load %arg4[%c0_13, %c0_14] : memref<1x64xf32, #tpu.memory_space<vmem>>, vector<1x64xf32>
      %14 = vector.broadcast %13 : vector<1x64xf32> to vector<16x64xf32>
      %15 = arith.addf %12, %14 : vector<16x64xf32>
      %16 = math.tanh %15 : vector<16x64xf32>
      %17 = arith.truncf %16 : vector<16x64xf32> to vector<16x64xbf16>
      %c0_15 = arith.constant 0 : index
      %c0_16 = arith.constant 0 : index
      %18 = vector.load %arg8[%c0_15, %c0_16] : memref<16x64xbf16, #tpu.memory_space<vmem>>, vector<16x64xbf16>
      tpu.vector_store %arg8[%c0_15, %c0_16], %17 {strides = array<i32>} : memref<16x64xbf16, #tpu.memory_space<vmem>>, vector<16x64xbf16>,
    } else {
    }
    %c0 = arith.constant 0 : index
    %c0_1 = arith.constant 0 : index
    %3 = vector.load %arg8[%c0, %c0_1] : memref<16x64xbf16, #tpu.memory_space<vmem>>, vector<16x64xbf16>
    %c0_2 = arith.constant 0 : index
    %c0_3 = arith.constant 0 : index
    %4 = vector.load %arg5[%c0_2, %c0_3] : memref<64x256xbf16, #tpu.memory_space<vmem>>, vector<64x256xbf16>
    %cst = arith.constant dense<0.000000e+00> : vector<16x256xf32>
    %5 = tpu.matmul %3, %4, %cst {dimension_numbers = #tpu.dot_dimension_numbers<[1], [0], [0], [1], [0, 0, 1, 1], [], []>} : vector<16x64xbf16>, vector<64x256xbf16>, vector<16x256xf32> -> vector<16x256xf32>
    %c0_4 = arith.constant 0 : index
    %c0_5 = arith.constant 0 : index
    %6 = vector.load %arg6[%c0_4, %c0_5] : memref<1x256xf32, #tpu.memory_space<vmem>>, vector<1x256xf32>
    %7 = vector.broadcast %6 : vector<1x256xf32> to vector<16x256xf32>
    %8 = arith.addf %5, %7 : vector<16x256xf32>
    %c0_6 = arith.constant 0 : index
    %c0_7 = arith.constant 0 : index
    %9 = vector.load %arg7[%c0_6, %c0_7] : memref<16x256xf32, #tpu.memory_space<vmem>>, vector<16x256xf32>
    tpu.vector_store %arg7[%c0_6, %c0_7], %8 {strides = array<i32>} : memref<16x256xf32, #tpu.memory_space<vmem>>, vector<16x256xf32>,
    return
  }
  func.func @transform_0(%arg0: i32, %arg1: i32) -> (i32, i32) {
    %c0_i32 = arith.constant 0 : i32
    %c0_i32_0 = arith.constant 0 : i32
    return %arg0, %c0_i32 : i32, i32
  }
  func.func @transform_1(%arg0: i32, %arg1: i32) -> (i32, i32) {
    %c0_i32 = arith.constant 0 : i32
    %c0_i32_0 = arith.constant 0 : i32
    %c0_i32_1 = arith.constant 0 : i32
    return %c0_i32, %c0_i32_0 : i32, i32
  }
  func.func @transform_2(%arg0: i32, %arg1: i32) -> (i32, i32) {
    %c0_i32 = arith.constant 0 : i32
    %c0_i32_0 = arith.constant 0 : i32
    %c0_i32_1 = arith.constant 0 : i32
    return %c0_i32, %c0_i32_0 : i32, i32
  }
  func.func @transform_3(%arg0: i32, %arg1: i32) -> (i32, i32) {
    %c0_i32 = arith.constant 0 : i32
    %c0_i32_0 = arith.constant 0 : i32
    return %c0_i32, %arg1 : i32, i32
  }
  func.func @transform_4(%arg0: i32, %arg1: i32) -> (i32, i32) {
    %c0_i32 = arith.constant 0 : i32
    %c0_i32_0 = arith.constant 0 : i32
    return %c0_i32, %arg1 : i32, i32
  }
  func.func @transform_5(%arg0: i32, %arg1: i32) -> (i32, i32) {
    %c0_i32 = arith.constant 0 : i32
    return %arg0, %arg1 : i32, i32
  }
}

</mosaic_0001>

<bundles_post_ra>
// kernel: tpu_custom_call.1
= control target key start
LH: loop header
LB: loop body
LE: loop exit
PB: predicated region body
PF: predicated region fallthrough
CT: control target
= control target key end

     0   :  { %10 = vsyncpa [#allocation4], 0  ;;  %s501_s0 = inlined_call_operand.hbm [shape: bf16[16,32], index: 0, kind: input, shape index: {}]   ;;  %s502_s1 = inlined_call_operand.hbm [shape: bf16[32,64], index: 1, kind: input, shape index: {}]   ;;  %s503_s2 = inlined_call_operand.vmem [shape: f32[1,64], index: 2, kind: input, shape index: {}]   ;;  %s504_s3 = inlined_call_operand.hbm [shape: bf16[64,256], index: 3, kind: input, shape index: {}]   ;;  %s505_s4 = inlined_call_operand.vmem [shape: f32[1,256], index: 4, kind: input, shape index: {}]   ;;  %s506_s5 = inlined_call_operand.hbm [shape: f32[16,256], index: 5, kind: output, shape index: {}]  }
   0x1   :  { %11 = vsyncpa [#allocation7], 0 }
   0x2   :  { %12 = vsyncpa [#allocation5], 0  ;;  %s440_s18 = smov [#allocation6]   ;;  %s441_s20 = smov [#allocation3]  }
   0x3   :  { %s30_s19 = sshll.u32 %s440_s18, 4  ;;  %s18_s21 = sshll.u32 %s441_s20, 4  ;;  %s31_s19 = int_to_ptr.vmem [resolvable:$true] %s30_s19  ;;  %s19_s21 = int_to_ptr.vmem [resolvable:$true] %s18_s21 }
   0x4   :  { %s362_s22 = scalar_lea.vmem %s31_s19, 256  ;;  %p367_p1 = scmp.lt.s32.totalorder %s31_s19, %s31_s19 }
   0x5   :  { %p363_p0 = scmp.ne.s32.totalorder %s31_s19, %s362_s22  ;;  %p368_p2 = scmp.lt.s32.totalorder %s362_s22, %s362_s22 }
   0x7   :  { %p369_p3 = por %p368_p2, %p367_p1 }
   0x9   :  { %p370_p4 = pnand %p369_p3, %p363_p0 }
   0xb   :  { %373 = shalt.err (!%p370_p4)
}
   0xc   :  { %s442_s23 = smov 64   ;;  %s443_s24 = smov 4  }
   0xd   :  { %36 = dma.hbm_to_vmem [thread:$0]  %s502_s1, 256, %s31_s19, [#allocation7], %s442_s23, %s442_s23, %s443_s24  }
   0xe   :  { %s382_s27 = scalar_lea.vmem %s19_s21, 128  ;;  %p387_p6 = scmp.lt.s32.totalorder %s19_s21, %s19_s21 }
   0xf   :  { %p383_p5 = scmp.ne.s32.totalorder %s19_s21, %s382_s27  ;;  %p388_p7 = scmp.lt.s32.totalorder %s382_s27, %s382_s27 }
  0x11   :  { %p389_p8 = por %p388_p7, %p387_p6 }
  0x13   :  { %p390_p9 = pnand %p389_p8, %p383_p5 }
  0x15   :  { %393 = shalt.err (!%p390_p9)
}
  0x16   :  { %24 = dma.hbm_to_vmem [thread:$0]  %s501_s0, 128, %s19_s21, [#allocation4], %s442_s23, %s442_s23, %s443_s24  }
  0x17   :  { %s444_s30 = smov [#allocation8]  }
  0x18   :  { %s44_s6 = sshll.u32 %s444_s30, 4  ;;  %s45_s6 = int_to_ptr.vmem [resolvable:$true] %s44_s6 }
  0x19   :  { %s402_s7 = scalar_lea.vmem %s45_s6, 1024  ;;  %p407_p11 = scmp.lt.s32.totalorder %s45_s6, %s45_s6 }
  0x1a   :  { %p403_p10 = scmp.ne.s32.totalorder %s45_s6, %s402_s7  ;;  %p408_p12 = scmp.lt.s32.totalorder %s402_s7, %s402_s7 }
  0x1c   :  { %p409_p13 = por %p408_p12, %p407_p11 }
  0x1e   :  { %p410_p0 = pnand %p409_p13, %p403_p10 }
  0x20   :  { %413 = shalt.err (!%p410_p0)
}
  0x21   :  { %s445_s1 = smov 128   ;;  %s446_s8 = smov 8  }
  0x22   :  { %50 = dma.hbm_to_vmem [thread:$0]  %s504_s3, 1024, %s45_s6, [#allocation7], %s445_s1, %s445_s1, %s446_s8  }
  0x23   :  { %434 = dma.done.wait [#allocation4], 128  }
  0x24   :  { %435 = vsyncadd [#allocation4], 4294967168 }
  0x25   :  { %436 = dma.done.wait [#allocation7], 1280  }
  0x26   :  { %437 = vsyncadd [#allocation7], 4294966016  ;;  %v447_v0 = vmov 0.0   ;;  %vm448_vm0 = vmmov 0   ;;  %v334_v1 = vld [vmem:[#allocation6 + $0x8] sm:$0xff]   ;;  %v335_v2 = vld [vmem:[#allocation6] sm:$0xff]   ;;  %v167_v25 = vlaneseq }
  0x27   :  { %313 = vmatprep.subr.bf16.mxu0 %v447_v0  ;;  %317 = vmatprep.mubr.msk.bf16.mxu0 %vm448_vm0, %v447_v0  ;;  %v336_v3 = vld [vmem:[#allocation3] sm:$0xff]   ;;  %vm97_vm1 = vcmask 261120   ;;  %v337_v4 = vld [vmem:[#allocation8 + $0x34] ss:$8 sps:$4 sm:$0xff]   ;;  %v339_v5 = vld [vmem:[#allocation8 + $0x30] ss:$8 sps:$4 sm:$0xff]  }
  0x28   :  { %314 = vmatpush3.bf16.msra.mxu0 %v334_v1  ;;  %234 = vmatprep.subr.bf16.mxu1 %v337_v4  ;;  %v340_v6 = vld [vmem:[#allocation8 + $0x24] ss:$8 sps:$4 sm:$0xff]   ;;  %v342_v7 = vld [vmem:[#allocation8 + $0x20] ss:$8 sps:$4 sm:$0xff]   ;;  %v343_v8 = vld [vmem:[#allocation8 + $0x14] ss:$8 sps:$4 sm:$0xff]  }
  0x29   :  { %315 = vmatprep.subr.bf16.mxu0 %v447_v0  ;;  %235 = vmatpush1.bf16.msra.mxu1 %v339_v5  ;;  %v345_v9 = vld [vmem:[#allocation8 + $0x10] ss:$8 sps:$4 sm:$0xff]   ;;  %v346_v10 = vld [vmem:[#allocation8 + $0x4] ss:$8 sps:$4 sm:$0xff]   ;;  %v348_v11 = vld [vmem:[#allocation8] ss:$8 sps:$4 sm:$0xff]  }
  0x2a   :  { %236 = vmatprep.subr.bf16.mxu1 %v340_v6  ;;  %v449_v12 = vmov 0   ;;  %v291_v13 = vld [vmem:[%s503_s2] ss:$0 sm:$0xff]  ;;  %vm152_vm2 = vcmask 519168   ;;  %vm222_vm3 = vcmask 523264   ;;  %v168_v26 = vshrl.u32 %v167_v25, 7 }
  0x2b   :  { %258 = vmatprep.mubr.bf16.mxu1 %v449_v12  ;;  %v165_v28 = vld [vmem:[%s505_s4] sm:$0x3]  ;;  %s450_s12 = smov [#allocation9]  }
  0x2c   :  { %316 = vmatpush3.bf16.msra.mxu0 %v335_v2  ;;  %v169_v27 = vsub.s32 0, %v168_v26  ;;  %v173_v29 = vsub.s32 1, %v168_v26  ;;  %s278_s13 = sshll.u32 %s450_s12, 4  ;;  %s279_s13 = int_to_ptr.vmem [resolvable:$true] %s278_s13 }
  0x2d   :  { %237 = vmatpush1.bf16.msra.mxu1 %v342_v7  ;;  %s414_s14 = scalar_lea.vmem %s279_s13, 512  ;;  %p419_p2 = scmp.lt.s32.totalorder %s279_s13, %s279_s13 }
  0x2e   :  { %238 = vmatprep.subr.bf16.mxu1 %v343_v8  ;;  %v170_v30 = vrot.slane %v165_v28, %v169_v27  ;;  %v174_v31 = vrot.slane %v165_v28, %v173_v29  ;;  %p415_p1 = scmp.ne.s32.totalorder %s279_s13, %s414_s14  ;;  %p420_p3 = scmp.lt.s32.totalorder %s414_s14, %s414_s14 }
  0x2f   :  { %318 = vmatmul.mubr.msk.bf16.vlgmr.msra.gmra.mxu0 %vm97_vm1, %v336_v3 }
  0x30   :  { %p421_p4 = por %p420_p3, %p419_p2 }
  0x31   :  { %239 = vmatpush1.bf16.msra.mxu1 %v345_v9 }
  0x32   :  { %240 = vmatprep.subr.bf16.mxu1 %v346_v10  ;;  %p422_p5 = pnand %p421_p4, %p415_p1 }
  0x35   :  { %241 = vmatpush1.bf16.msra.mxu1 %v348_v11 }
  0xef   :  { %v135_v14 = vpop.f32.mrf.mxu0 }
  0xf0   :  { %v136_v15 = vadd.f32 %v291_v13, %v135_v14 }
  0xf1   :  { %v319_v16 = vpop.f32.mrf.mxu0 }
  0xf2   :  { %350 = vtanh.f32 %v136_v15 }
  0xf3   :  { %v138_v17 = vpop.f32.mrf.mxu0 }
  0xf4   :  { %v139_v18 = vadd.f32 %v291_v13, %v138_v17 }
  0xf5   :  { %v320_v19 = vpop.f32.mrf.mxu0 }
  0xf6   :  { %352 = vtanh.f32 %v139_v18 }
  0xff   :  { %v351_v20 = vpop.eup %350 }
 0x100   :  { %v308_v21 = vpack.c.bf16 %v351_v20, %v351_v20 }
 0x102   :  { %153 = vst.msk [vmem:[#allocation2] sm:$0xf] %vm152_vm2, %v308_v21 }
 0x103   :  { %v353_v22 = vpop.eup %352 }
 0x104   :  { %v309_v23 = vpack.c.bf16 %v353_v22, %v353_v22 }
 0x106   :  { %154 = vst.msk [vmem:[#allocation2 + $0x4] sm:$0xf] %vm152_vm2, %v309_v23 }
 0x10d   :  { %v349_v24 = vld [vmem:[#allocation2] sm:$0xff]  }
 0x10e   :  { %307 = vmatmul.mubr.msk.bf16.vlgmr.msra.gmra.mxu1 %vm222_vm3, %v349_v24 }
 0x1ce   :  { %v260_v32 = vpop.f32.mrf.mxu1 }
 0x1cf   :  { %v261_v33 = vadd.f32 %v260_v32, %v170_v30 }
 0x1d0   :  { %v262_v34 = vpop.f32.mrf.mxu1 }
 0x1d1   :  { %269 = vst [vmem:[#allocation9] sm:$0xff] %v261_v33  ;;  %v263_v35 = vadd.f32 %v262_v34, %v174_v31 }
 0x1d2   :  { %v264_v36 = vpop.f32.mrf.mxu1 }
 0x1d3   :  { %270 = vst [vmem:[#allocation9 + $0x8] sm:$0xff] %v263_v35  ;;  %v265_v37 = vadd.f32 %v264_v36, %v170_v30 }
 0x1d4   :  { %v266_v38 = vpop.f32.mrf.mxu1 }
 0x1d5   :  { %271 = vst [vmem:[#allocation9 + $0x10] sm:$0xff] %v265_v37  ;;  %v267_v39 = vadd.f32 %v266_v38, %v174_v31 }
 0x1d7   :  { %272 = vst [vmem:[#allocation9 + $0x18] sm:$0xff] %v267_v39 }
 0x1d8   :  { %425 = shalt.err (!%p422_p5)
}
 0x1d9   :  { %s451_s4 = smov 256   ;;  %s452_s15 = smov 16  }
 0x1da   :  { %284 = dma.vmem_to_hbm [thread:$0]  %s279_s13, 512, %s506_s5, [#allocation5], %s451_s4, %s451_s4, %s452_s15  }
 0x1db   :  { %438 = dma.done.wait [#allocation5], 512  }
 0x1dc   :  { %439 = vsyncadd [#allocation5], 4294966784 }
 0x1dd   :  { %288 = vsyncpa [#allocation4], 1 }
 0x1de   :  { %289 = vsyncpa [#allocation7], 1 }
 0x1df   :  { %290 = vsyncpa [#allocation5], 1 }

</bundles_post_ra>
